<compile_context>
chip_gen: v6e
topology: v6e:2x2x1
jax: 0.10.0
libtpu: 0.0.40
codegen_flags: <defaults>
</compile_context>

<pallas_src>
import functools

import jax
import jax.numpy as jnp
from jax.experimental import pallas as pl
from jax.experimental.pallas import tpu as pltpu

LANES = 128
MAX_BLOCK_ROWS = 4096       # (4096, 128) f32 tile = 2 MiB; x2 inputs x2 buffers = 8 MiB
USER_BLOCK_ROWS_CAP = 8192


def _round_up(x, m):
    return ((x + m - 1) // m) * m


def _sublane_multiple(dtype):
    # Native TPU tiling: (8,128) f32, (16,128) bf16, (32,128) int8/fp8.
    return max(8, 32 // jnp.dtype(dtype).itemsize)


def _num_parallel_splits():
    # The 2-way "parallel" grid split only pays off on dual-TensorCore chips
    # (v7x); on v5e/v6e it is just a serial loop with duplicated init/epilogue.
    try:
        kind = jax.devices()[0].device_kind.lower()
    except Exception:
        return 1
    return 2 if "v7" in kind else 1


def _focal_loss_math(x, z, alpha, gamma, *, in_kernel):
    """Per-element sigmoid focal loss in f32; valid for binary labels z in {0,1}."""
    x = x.astype(jnp.float32)
    z = z.astype(jnp.float32)
    e = jnp.exp(-jnp.abs(x))                              # EUP, reused twice below
    # nn.BCEWithLogitsLoss(reduction='none'), numerically stable form:
    #   ce = max(x, 0) - x*z + log(1 + exp(-|x|))
    ce = jnp.maximum(x, 0.0) - x * z + jnp.log1p(e)
    # 1 - pt directly from e (no extra exp(-ce), no 1 - exp(-ce) cancellation):
    #   1 - pt = e / (1 + e)   if (z == 1) == (x >= 0)
    #          = 1 / (1 + e)   otherwise
    flip = jnp.logical_xor(z == 1.0, x >= 0.0)
    num = jnp.where(flip, 1.0, e)
    if in_kernel:
        inv = pl.reciprocal(1.0 + e, approx=False)        # EUP slot, off the log1p chain
    else:
        inv = 1.0 / (1.0 + e)
    one_minus_pt = num * inv
    # Integer gamma as plain multiplies (gamma=2 -> a single square).
    g_int = int(gamma)
    if float(gamma) == float(g_int) and g_int >= 0:
        mod = jnp.ones_like(ce) if g_int == 0 else one_minus_pt
        for _ in range(max(g_int - 1, 0)):
            mod = mod * one_minus_pt
    else:
        mod = jnp.power(one_minus_pt, jnp.float32(gamma))
    # alpha if z == 1 else (1 - alpha), arithmetically (binary labels).
    alpha_w = (1.0 - alpha) + (2.0 * alpha - 1.0) * z
    return alpha_w * mod * ce


def _focal_loss_kernel(x_ref, z_ref, out_ref, acc_ref, *, alpha, gamma,
                       rows_valid, block_rows, total_blocks, inner_blocks,
                       mask_needed):
    s = pl.program_id(0)            # parallel split index (v7x TensorCores)
    i = pl.program_id(1)            # reduction step within the split
    g = s * inner_blocks + i        # global block index

    @pl.when(i == 0)
    def _():
        acc_ref[...] = jnp.zeros_like(acc_ref)

    loss = _focal_loss_math(x_ref[...], z_ref[...], alpha, gamma, in_kernel=True)

    def _accumulate(v):
        # (block_rows,128) -> (block_rows//8, 8, 128): each (8,128) slab is one
        # f32 vreg group, so this is pure VPU adds into a single-vreg accumulator.
        acc_ref[...] += v.reshape(-1, 8, LANES).sum(axis=0)

    if mask_needed:
        @pl.when(g < total_blocks - 1)
        def _():
            _accumulate(loss)

        @pl.when(g == total_blocks - 1)
        def _():
            # The last block may extend past `rows_valid` rows; those rows hold
            # garbage (possibly NaN/Inf). jnp.where is a *select*, so the
            # garbage never reaches the accumulator. Do NOT turn this into a
            # multiply-by-mask.
            row_i = jax.lax.broadcasted_iota(jnp.int32, loss.shape, 0)
            valid = (g * block_rows + row_i) < rows_valid
            _accumulate(jnp.where(valid, loss, 0.0))
    else:
        _accumulate(loss)

    @pl.when(i == inner_blocks - 1)
    def _():
        # Per-split (1,128) lane partial; the final tiny reduce is in the wrapper.
        out_ref[...] = jnp.sum(acc_ref[...], axis=0, keepdims=True)


def focal_loss(logits, label, *, alpha=0.25, gamma=2.0, reduction='mean',
               avg_factor=None, block_rows=None):
    """Pallas equivalent of FocalLoss.forward for 1-D logits/label of shape (N,)."""
    if reduction not in ('mean', 'sum'):
        # TODO(synk): reduction='none' (unreduced per-element loss) is not
        # implemented in the Pallas path.
        raise NotImplementedError("focal_loss supports reduction='mean'|'sum'")

    n = logits.shape[0]
    assert label.shape == (n,), (logits.shape, label.shape)
    alpha = float(alpha)
    gamma = float(gamma)

    # Row granularity so blocks respect the native tiling of both dtypes.
    gran = max(_sublane_multiple(logits.dtype), _sublane_multiple(label.dtype))
    rows = n // LANES
    use_kernel = rows >= gran
    n_kernel = rows * LANES if use_kernel else 0

    total = jnp.float32(0.0)

    if use_kernel:
        # Lane-aligned prefix only — no full-array pad copy is ever written.
        lg = logits[:n_kernel].reshape(rows, LANES)
        lb = label[:n_kernel].reshape(rows, LANES)

        if block_rows is None:
            block_rows = MAX_BLOCK_ROWS
        block_rows = max(gran, min(int(block_rows), USER_BLOCK_ROWS_CAP))
        block_rows = _round_up(block_rows, gran)
        block_rows = min(block_rows, (rows // gran) * gran)

        total_blocks = pl.cdiv(rows, block_rows)
        num_splits = _num_parallel_splits()
        if total_blocks < num_splits or total_blocks % num_splits != 0:
            # Keep both v7x TensorCores balanced and never issue a clamped,
            # fully-masked duplicate block.
            num_splits = 1
        inner_blocks = total_blocks // num_splits
        mask_needed = (rows % block_rows) != 0

        kernel = functools.partial(
            _focal_loss_kernel, alpha=alpha, gamma=gamma, rows_valid=rows,
            block_rows=block_rows, total_blocks=total_blocks,
            inner_blocks=inner_blocks, mask_needed=mask_needed)

        in_tile_bytes = block_rows * LANES * (lg.dtype.itemsize + lb.dtype.itemsize)
        # 2 pipeline buffers per input + accumulator/output + headroom; 32 MiB
        # floor is safe on v5e/v6e (128 MiB physical) and v7x (64 MiB physical).
        vmem_limit = min(max(3 * in_tile_bytes + (2 << 20), 32 << 20), 48 << 20)

        cost = pl.CostEstimate(
            flops=15 * n_kernel,
            transcendentals=3 * n_kernel,
            bytes_accessed=n_kernel * (lg.dtype.itemsize + lb.dtype.itemsize)
            + num_splits * LANES * 4)

        partials = pl.pallas_call(
            kernel,
            out_shape=jax.ShapeDtypeStruct((num_splits, LANES), jnp.float32),
            grid_spec=pltpu.PrefetchScalarGridSpec(
                num_scalar_prefetch=0,
                grid=(num_splits, inner_blocks),
                in_specs=[
                    pl.BlockSpec((block_rows, LANES),
                                 lambda s, i: (s * inner_blocks + i, 0)),
                    pl.BlockSpec((block_rows, LANES),
                                 lambda s, i: (s * inner_blocks + i, 0)),
                ],
                out_specs=pl.BlockSpec((1, LANES), lambda s, i: (s, 0)),
                scratch_shapes=[pltpu.VMEM((8, LANES), jnp.float32)],
            ),
            compiler_params=pltpu.CompilerParams(
                dimension_semantics=("parallel", "arbitrary"),
                vmem_limit_bytes=int(vmem_limit)),
            cost_estimate=cost,
        )(lg, lb)
        total = total + jnp.sum(partials)

    if n_kernel < n:
        # Small unaligned tail (< gran*128 elements): plain jnp, no pad copy.
        tail = _focal_loss_math(logits[n_kernel:], label[n_kernel:],
                                alpha, gamma, in_kernel=False)
        total = total + jnp.sum(tail)

    if reduction == 'mean':
        return total / jnp.float32(n)
    # reduction == 'sum'; torch only divides when avg_factor is truthy.
    # avg_factor must be a static Python number (traced values raise clearly).
    if avg_factor is not None and float(avg_factor) != 0.0:
        total = total / avg_factor
    return total


def _focal_loss_ref(logits, label, alpha=0.25, gamma=2.0, reduction='mean',
                    avg_factor=None):
    """Pure-JAX reference matching the PyTorch module."""
    x = logits.astype(jnp.float32)
    z = label.astype(jnp.float32)
    ce = jnp.maximum(x, 0.0) - x * z + jnp.log1p(jnp.exp(-jnp.abs(x)))
    p = jax.nn.sigmoid(x)
    pt = jnp.where(z == 1.0, p, 1.0 - p)
    aw = jnp.where(z == 1.0, alpha, 1.0 - alpha)
    loss = aw * (1.0 - pt) ** gamma * ce
    if reduction == 'mean':
        return jnp.mean(loss)
    out = jnp.sum(loss)
    if avg_factor:
        out = out / avg_factor
    return out


if __name__ == "__main__":
    key = jax.random.PRNGKey(0)
    k1, k2, k3, k4 = jax.random.split(key, 4)

    # 1) f32 inputs, unaligned N (2-element tail handled in the wrapper), mean.
    N = 2050
    logits = jax.random.normal(k1, (N,), dtype=jnp.float32) * 2.0
    label = jax.random.bernoulli(k2, p=0.3, shape=(N,)).astype(jnp.float32)
    out = jax.block_until_ready(focal_loss(logits, label, alpha=0.25, gamma=2.0))
    ref = _focal_loss_ref(logits, label)
    assert jnp.allclose(out, ref, rtol=1e-5, atol=1e-6), (out, ref)

    # 2) multi-block grid with a masked partial last block + jnp tail.
    N2 = 1346   # rows = 10, block_rows = 8 -> 2 blocks, last block partial
    logits2 = jax.random.normal(k3, (N2,), dtype=jnp.float32)
    label2 = jax.random.bernoulli(k4, p=0.5, shape=(N2,)).astype(jnp.float32)
    out2 = jax.block_until_ready(focal_loss(logits2, label2, block_rows=8))
    ref2 = _focal_loss_ref(logits2, label2)
    assert jnp.allclose(out2, ref2, rtol=1e-5, atol=1e-6), (out2, ref2)

    # 3) narrowed inputs (bf16 logits, int8 labels), sum reduction + avg_factor.
    N3 = 4096
    k5, k6 = jax.random.split(k4)
    logits3 = jax.random.normal(k5, (N3,), dtype=jnp.float32).astype(jnp.bfloat16)
    label3 = jax.random.bernoulli(k6, p=0.5, shape=(N3,)).astype(jnp.int8)
    out3 = jax.block_until_ready(
        focal_loss(logits3, label3, reduction='sum', avg_factor=4.0))
    ref3 = _focal_loss_ref(logits3, label3, reduction='sum', avg_factor=4.0)
    assert jnp.allclose(out3, ref3, rtol=1e-5, atol=1e-4), (out3, ref3)

    print("KERNEL_OK")
</pallas_src>

<mosaic_0001>
module attributes {stable_mosaic.version = 11 : i64} {
  func.func @_focal_loss_kernel(%arg0: i32, %arg1: i32, %arg2: memref<16x128xf32, #tpu.memory_space<vmem>>, %arg3: memref<16x128xf32, #tpu.memory_space<vmem>>, %arg4: memref<1x128xf32, #tpu.memory_space<vmem>>, %arg5: memref<8x128xf32, #tpu.memory_space<vmem>>) attributes {dimension_semantics = [#tpu.dimension_semantics<parallel>, #tpu.dimension_semantics<arbitrary>], iteration_bounds = array<i64: 1, 1>, scalar_prefetch = 0 : i64, scratch_operands = 1 : i64, tpu.core_type = #tpu.core_type<tc>, window_params = [{transform_indices = @transform_0, window_bounds = array<i64: 16, 128>}, {transform_indices = @transform_1, window_bounds = array<i64: 16, 128>}, {transform_indices = @transform_2, window_bounds = array<i64: 1, 128>}]} {
    %c0_i32 = arith.constant 0 : i32
    %0 = arith.cmpi eq, %arg1, %c0_i32 : i32
    %1 = arith.extui %0 : i1 to i32
    %c0_i32_0 = arith.constant 0 : i32
    %2 = arith.cmpi ne, %1, %c0_i32_0 : i32
    scf.if %2 {
      %cst_18 = arith.constant 0.000000e+00 : f32
      %41 = vector.broadcast %cst_18 : f32 to vector<8x128xf32>
      %c0_19 = arith.constant 0 : index
      %c0_20 = arith.constant 0 : index
      %42 = vector.load %arg5[%c0_19, %c0_20] : memref<8x128xf32, #tpu.memory_space<vmem>>, vector<8x128xf32>
      tpu.vector_store %arg5[%c0_19, %c0_20], %41 {strides = array<i32>} : memref<8x128xf32, #tpu.memory_space<vmem>>, vector<8x128xf32>,
    } else {
    }
    %c0 = arith.constant 0 : index
    %c0_1 = arith.constant 0 : index
    %3 = vector.load %arg2[%c0, %c0_1] : memref<16x128xf32, #tpu.memory_space<vmem>>, vector<16x128xf32>
    %c0_2 = arith.constant 0 : index
    %c0_3 = arith.constant 0 : index
    %4 = vector.load %arg3[%c0_2, %c0_3] : memref<16x128xf32, #tpu.memory_space<vmem>>, vector<16x128xf32>
    %5 = math.absf %3 : vector<16x128xf32>
    %cst = arith.constant 0.000000e+00 : f32
    %6 = vector.broadcast %cst : f32 to vector<16x128xf32>
    %7 = arith.subf %6, %5 : vector<16x128xf32>
    %8 = math.exp %7 : vector<16x128xf32>
    %cst_4 = arith.constant 0.000000e+00 : f32
    %9 = vector.broadcast %cst_4 : f32 to vector<16x128xf32>
    %10 = arith.maximumf %3, %9 : vector<16x128xf32>
    %11 = arith.mulf %3, %4 : vector<16x128xf32>
    %12 = arith.subf %10, %11 : vector<16x128xf32>
    %13 = math.log1p %8 : vector<16x128xf32>
    %14 = arith.addf %12, %13 : vector<16x128xf32>
    %cst_5 = arith.constant 1.000000e+00 : f32
    %15 = vector.broadcast %cst_5 : f32 to vector<16x128xf32>
    %16 = arith.cmpf oeq, %4, %15 : vector<16x128xf32>
    %cst_6 = arith.constant 0.000000e+00 : f32
    %17 = vector.broadcast %cst_6 : f32 to vector<16x128xf32>
    %18 = arith.cmpf oge, %3, %17 : vector<16x128xf32>
    %19 = arith.xori %16, %18 : vector<16x128xi1>
    %cst_7 = arith.constant 1.000000e+00 : f32
    %20 = vector.broadcast %cst_7 : f32 to vector<16x128xf32>
    %21 = arith.select %19, %20, %8 : vector<16x128xi1>, vector<16x128xf32>
    %cst_8 = arith.constant 1.000000e+00 : f32
    %22 = vector.broadcast %cst_8 : f32 to vector<16x128xf32>
    %23 = arith.addf %22, %8 : vector<16x128xf32>
    %24 = tpu.reciprocal %23 : vector<16x128xf32> -> vector<16x128xf32>
    %25 = arith.mulf %21, %24 : vector<16x128xf32>
    %26 = arith.mulf %25, %25 : vector<16x128xf32>
    %cst_9 = arith.constant -5.000000e-01 : f32
    %27 = vector.broadcast %cst_9 : f32 to vector<16x128xf32>
    %28 = arith.mulf %27, %4 : vector<16x128xf32>
    %cst_10 = arith.constant 7.500000e-01 : f32
    %29 = vector.broadcast %cst_10 : f32 to vector<16x128xf32>
    %30 = arith.addf %29, %28 : vector<16x128xf32>
    %31 = arith.mulf %30, %26 : vector<16x128xf32>
    %32 = arith.mulf %31, %14 : vector<16x128xf32>
    %c0_11 = arith.constant 0 : index
    %c0_12 = arith.constant 0 : index
    %33 = vector.load %arg5[%c0_11, %c0_12] : memref<8x128xf32, #tpu.memory_space<vmem>>, vector<8x128xf32>
    %34 = vector.shape_cast %32 : vector<16x128xf32> to vector<2x8x128xf32>
    %cst_13 = arith.constant dense<0.000000e+00> : vector<8x128xf32>
    %35 = vector.multi_reduction <add>, %34, %cst_13 [0] : vector<2x8x128xf32> to vector<8x128xf32>
    %36 = arith.addf %33, %35 : vector<8x128xf32>
    %c0_14 = arith.constant 0 : index
    %c0_15 = arith.constant 0 : index
    %37 = vector.load %arg5[%c0_14, %c0_15] : memref<8x128xf32, #tpu.memory_space<vmem>>, vector<8x128xf32>
    tpu.vector_store %arg5[%c0_14, %c0_15], %36 {strides = array<i32>} : memref<8x128xf32, #tpu.memory_space<vmem>>, vector<8x128xf32>,
    %c0_i32_16 = arith.constant 0 : i32
    %38 = arith.cmpi eq, %arg1, %c0_i32_16 : i32
    %39 = arith.extui %38 : i1 to i32
    %c0_i32_17 = arith.constant 0 : i32
    %40 = arith.cmpi ne, %39, %c0_i32_17 : i32
    scf.if %40 {
      %c0_18 = arith.constant 0 : index
      %c0_19 = arith.constant 0 : index
      %41 = vector.load %arg5[%c0_18, %c0_19] : memref<8x128xf32, #tpu.memory_space<vmem>>, vector<8x128xf32>
      %cst_20 = arith.constant dense<0.000000e+00> : vector<128xf32>
      %42 = vector.multi_reduction <add>, %41, %cst_20 [0] : vector<8x128xf32> to vector<128xf32>
      %43 = vector.shape_cast %42 : vector<128xf32> to vector<1x128xf32>
      %c0_21 = arith.constant 0 : index
      %c0_22 = arith.constant 0 : index
      %44 = vector.load %arg4[%c0_21, %c0_22] : memref<1x128xf32, #tpu.memory_space<vmem>>, vector<1x128xf32>
      tpu.vector_store %arg4[%c0_21, %c0_22], %43 {strides = array<i32>} : memref<1x128xf32, #tpu.memory_space<vmem>>, vector<1x128xf32>,
    } else {
    }
    return
  }
  func.func @transform_0(%arg0: i32, %arg1: i32) -> (i32, i32) {
    %c1_i32 = arith.constant 1 : i32
    %0 = arith.muli %arg0, %c1_i32 : i32
    %1 = arith.addi %0, %arg1 : i32
    %c0_i32 = arith.constant 0 : i32
    %c0_i32_0 = arith.constant 0 : i32
    return %1, %c0_i32 : i32, i32
  }
  func.func @transform_1(%arg0: i32, %arg1: i32) -> (i32, i32) {
    %c1_i32 = arith.constant 1 : i32
    %0 = arith.muli %arg0, %c1_i32 : i32
    %1 = arith.addi %0, %arg1 : i32
    %c0_i32 = arith.constant 0 : i32
    %c0_i32_0 = arith.constant 0 : i32
    return %1, %c0_i32 : i32, i32
  }
  func.func @transform_2(%arg0: i32, %arg1: i32) -> (i32, i32) {
    %c0_i32 = arith.constant 0 : i32
    %c0_i32_0 = arith.constant 0 : i32
    return %arg0, %c0_i32 : i32, i32
  }
}

</mosaic_0001>

<bundles_post_ra>
// kernel: tpu_custom_call.1
= control target key start
LH: loop header
LB: loop body
LE: loop exit
PB: predicated region body
PF: predicated region fallthrough
CT: control target
= control target key end

     0   :  { %7 = vsyncpa [#allocation4], 0  ;;  %s280_s0 = inlined_call_operand.hbm [shape: f32[16,128], index: 0, kind: input, shape index: {}]   ;;  %s281_s1 = inlined_call_operand.hbm [shape: f32[16,128], index: 1, kind: input, shape index: {}]   ;;  %s282_s2 = inlined_call_operand.hbm [shape: f32[1,128], index: 2, kind: output, shape index: {}]  }
   0x1   :  { %8 = vsyncpa [#allocation7], 0 }
   0x2   :  { %9 = vsyncpa [#allocation5], 0  ;;  %s233_s9 = smov [#allocation3]  }
   0x3   :  { %s19_s10 = sshll.u32 %s233_s9, 4  ;;  %s20_s10 = int_to_ptr.vmem [resolvable:$true] %s19_s10 }
   0x4   :  { %s175_s11 = scalar_lea.vmem %s20_s10, 256  ;;  %p180_p1 = scmp.lt.s32.totalorder %s20_s10, %s20_s10 }
   0x5   :  { %p176_p0 = scmp.ne.s32.totalorder %s20_s10, %s175_s11  ;;  %p181_p2 = scmp.lt.s32.totalorder %s175_s11, %s175_s11 }
   0x7   :  { %p182_p3 = por %p181_p2, %p180_p1 }
   0x9   :  { %p183_p4 = pnand %p182_p3, %p176_p0 }
   0xb   :  { %186 = shalt.err (!%p183_p4)
}
   0xc   :  { %s234_s12 = smov 128   ;;  %s235_s13 = smov 8  }
   0xd   :  { %25 = dma.hbm_to_vmem [thread:$0]  %s280_s0, 256, %s20_s10, [#allocation4], %s234_s12, %s234_s12, %s235_s13  }
   0xe   :  { %s236_s16 = smov [#allocation6]  }
   0xf   :  { %s35_s17 = sshll.u32 %s236_s16, 4  ;;  %s36_s17 = int_to_ptr.vmem [resolvable:$true] %s35_s17 }
  0x10   :  { %s195_s18 = scalar_lea.vmem %s36_s17, 256  ;;  %p200_p6 = scmp.lt.s32.totalorder %s36_s17, %s36_s17 }
  0x11   :  { %p196_p5 = scmp.ne.s32.totalorder %s36_s17, %s195_s18  ;;  %p201_p7 = scmp.lt.s32.totalorder %s195_s18, %s195_s18 }
  0x13   :  { %p202_p8 = por %p201_p7, %p200_p6 }
  0x15   :  { %p203_p9 = pnand %p202_p8, %p196_p5 }
  0x17   :  { %206 = shalt.err (!%p203_p9)
}
  0x18   :  { %41 = dma.hbm_to_vmem [thread:$0]  %s281_s1, 256, %s36_s17, [#allocation7], %s234_s12, %s234_s12, %s235_s13  }
  0x19   :  { %227 = dma.done.wait [#allocation4], 256  }
  0x1a   :  { %228 = vsyncadd [#allocation4], 4294967040 }
  0x1b   :  { %229 = dma.done.wait [#allocation7], 256  }
  0x1c   :  { %230 = vsyncadd [#allocation7], 4294967040  ;;  %v57_v0 = vld [vmem:[#allocation3] sm:$0xff]  ;;  %v58_v1 = vld [vmem:[#allocation3 + $0x8] sm:$0xff]  ;;  %s237_s0 = smov [#allocation8]  }
  0x1d   :  { %v61_v2 = vand.u32 2147483647, %v57_v0  ;;  %v62_v3 = vand.u32 2147483647, %v58_v1  ;;  %v59_v12 = vld [vmem:[#allocation6] sm:$0xff]  ;;  %v60_v14 = vld [vmem:[#allocation6 + $0x8] sm:$0xff] }
  0x1e   :  { %vm95_vm0 = vcmp.eq.f32.partialorder %v59_v12, 1.0  ;;  %vm97_vm1 = vcmp.ge.f32.partialorder %v57_v0, 0.0  ;;  %vm96_vm2 = vcmp.eq.f32.partialorder %v60_v14, 1.0  ;;  %vm98_vm3 = vcmp.ge.f32.partialorder %v58_v1, 0.0  ;;  %s140_s1 = sshll.u32 %s237_s0, 4  ;;  %s141_s1 = int_to_ptr.vmem [resolvable:$true] %s140_s1 }
  0x1f   :  { %v63_v4 = vsub.f32 0.0, %v61_v2  ;;  %v64_v5 = vsub.f32 0.0, %v62_v3  ;;  %v69_v19 = vmax.f32 %v57_v0, 0.0  ;;  %v71_v20 = vmul.f32 %v59_v12, %v57_v0  ;;  %vm259_vm4 = vmxor %vm95_vm0, %vm97_vm1  ;;  %s207_s21 = scalar_lea.vmem %s141_s1, 16  ;;  %s211_s22 = scalar_lea.vmem %s141_s1, 32 }
  0x20   :  { %v70_v23 = vmax.f32 %v58_v1, 0.0  ;;  %v72_v24 = vmul.f32 %v60_v14, %v58_v1  ;;  %vm263_vm5 = vmxor %vm96_vm2, %vm98_vm3  ;;  %v111_v27 = vmul.f32 -0.5, %v59_v12  ;;  %v112_v32 = vmul.f32 -0.5, %v60_v14  ;;  %p208_p10 = scmp.ne.s32.totalorder %s141_s1, %s207_s21  ;;  %p212_p11 = scmp.lt.s32.totalorder %s141_s1, %s141_s1 }
  0x21   :  { %v65_v6 = vmul.f32 1.442695, %v63_v4  ;;  %v67_v7 = vmul.f32 1.442695, %v64_v5  ;;  %v73_v34 = vsub.f32 %v69_v19, %v71_v20  ;;  %p213_p12 = scmp.lt.s32.totalorder %s211_s22, %s207_s21 }
  0x22   :  { %v74_v38 = vsub.f32 %v70_v23, %v72_v24  ;;  %v113_v43 = vadd.f32 0.75, %v111_v27  ;;  %v114_v46 = vadd.f32 0.75, %v112_v32 }
  0x23   :  { %155 = vpow2.f32 %v65_v6  ;;  %p214_p13 = por %p213_p12, %p212_p11 }
  0x24   :  { %157 = vpow2.f32 %v67_v7 }
  0x25   :  { %p215_p0 = pnand %p214_p13, %p208_p10 }
  0x30   :  { %v156_v8 = vpop.eup %155 }
  0x31   :  { %v158_v9 = vpop.eup %157  ;;  %v75_v10 = vadd.f32 1.0, %v156_v8  ;;  %v78_v13 = vmul.f32 -0.5, %v156_v8  ;;  %v81_v17 = vand.u32 2147483647, %v156_v8  ;;  %v101_v31 = vsel %vm259_vm4, 1.0, %v156_v8 }
  0x32   :  { %v84_v11 = vadd.f32 1.0, %v158_v9  ;;  %v87_v15 = vmul.f32 -0.5, %v158_v9  ;;  %v90_v21 = vand.u32 2147483647, %v158_v9  ;;  %v102_v36 = vsel %vm263_vm5, 1.0, %v158_v9 }
  0x33   :  { %159 = vlog2.f32 %v75_v10  ;;  %v79_v16 = vadd.f32 1.0, %v78_v13  ;;  %vm267_vm6 = vcmp.lt.f32.partialorder %v81_v17, 0.0004427343 }
  0x34   :  { %161 = vlog2.f32 %v84_v11  ;;  %v88_v18 = vadd.f32 1.0, %v87_v15  ;;  %vm91_vm7 = vcmp.lt.f32.partialorder %v90_v21, 0.0004427343 }
  0x35   :  { %163 = vrcp.f32 %v75_v10  ;;  %v80_v26 = vmul.f32 %v156_v8, %v79_v16 }
  0x36   :  { %165 = vrcp.f32 %v84_v11  ;;  %v89_v30 = vmul.f32 %v158_v9, %v88_v18 }
  0x40   :  { %v160_v28 = vpop.eup %159 }
  0x41   :  { %v162_v33 = vpop.eup %161  ;;  %v77_v35 = vmul.f32 0.6931472, %v160_v28 }
  0x42   :  { %v164_v37 = vpop.eup %163  ;;  %v86_v39 = vmul.f32 0.6931472, %v162_v33 }
  0x43   :  { %v166_v40 = vpop.eup %165  ;;  %v83_v41 = vsel %vm267_vm6, %v80_v26, %v77_v35  ;;  %v107_v42 = vmul.f32 %v164_v37, %v101_v31 }
  0x44   :  { %v92_v44 = vsel %vm91_vm7, %v89_v30, %v86_v39  ;;  %v108_v45 = vmul.f32 %v166_v40, %v102_v36  ;;  %v93_v47 = vadd.f32 %v83_v41, %v73_v34 }
  0x45   :  { %v109_v48 = vmul.f32 %v107_v42, %v107_v42  ;;  %v94_v49 = vadd.f32 %v92_v44, %v74_v38 }
  0x46   :  { %v110_v50 = vmul.f32 %v108_v45, %v108_v45 }
  0x47   :  { %v115_v51 = vmul.f32 %v113_v43, %v109_v48 }
  0x48   :  { %v116_v52 = vmul.f32 %v114_v46, %v110_v50 }
  0x49   :  { %v117_v53 = vmul.f32 %v115_v51, %v93_v47 }
  0x4a   :  { %v118_v54 = vmul.f32 %v116_v52, %v94_v49 }
  0x4c   :  { %v120_v55 = vadd.f32 %v118_v54, %v117_v53 }
  0x4e   :  { %v127_v56 = vrot.slane %v120_v55, 4 }
  0x50   :  { %v128_v57 = vadd.f32 %v127_v56, %v120_v55 }
  0x52   :  { %v129_v58 = vrot.slane %v128_v57, 2 }
  0x54   :  { %v130_v59 = vadd.f32 %v129_v58, %v128_v57 }
  0x56   :  { %v131_v60 = vrot.slane %v130_v59, 1 }
  0x58   :  { %v132_v61 = vadd.f32 %v131_v60, %v130_v59 }
  0x5a   :  { %133 = vst [vmem:[#allocation8] sm:$0x1] %v132_v61 }
  0x5b   :  { %218 = shalt.err (!%p215_p0)
}
  0x5c   :  { %143 = dma.vmem_to_hbm [thread:$0]  %s141_s1, 16, %s282_s2, [#allocation5]  }
  0x5d   :  { %231 = dma.done.wait [#allocation5], 16  }
  0x5e   :  { %232 = vsyncadd [#allocation5], 4294967280 }
  0x5f   :  { %147 = vsyncpa [#allocation4], 1 }
  0x60   :  { %148 = vsyncpa [#allocation7], 1 }
  0x61   :  { %149 = vsyncpa [#allocation5], 1 }

</bundles_post_ra>
